<compile_context>
chip_gen: v7x
topology: tpu7x:2x2x1
jax: 0.10.0
libtpu: 0.0.40
codegen_flags: <defaults>
</compile_context>

<pallas_src>
import math

import jax
import jax.numpy as jnp
from jax.experimental import pallas as pl
from jax.experimental.pallas import tpu as pltpu

_LOG_2PI = math.log(2.0 * math.pi)


# ---------------------------------------------------------------------------
# Pallas kernel: env_mlp -> actor_mlp (split first layer) -> fused heads -> stats
# One packed input slab, one packed output slab, resident weights.
# ---------------------------------------------------------------------------
def actor_critic_kernel(
    xin_ref,                                        # (TB, obs+priv+A) packed input
    ew0_ref, eb0_ref, ew1_ref, eb1_ref,             # env_mlp
    aw0o_ref, aw0e_ref, ab0_ref, aw1_ref, ab1_ref,  # actor_mlp (layer0 split obs/extrin)
    hw_ref, hb_ref,                                 # fused [mu || value] head
    stat_ref,                                       # (1, A+1): [exp(-logstd) | neglogp const]
    out_ref,                                        # (TB, A+E+2): [mu | extrin | value | neglogp]
):
    f32 = jnp.float32
    obs_dim = aw0o_ref.shape[0]
    priv_dim = ew0_ref.shape[0]
    E = ew1_ref.shape[1]
    A = stat_ref.shape[1] - 1

    xin = xin_ref[...]
    obs = xin[:, :obs_dim]
    priv = xin[:, obs_dim:obs_dim + priv_dim]
    act = xin[:, obs_dim + priv_dim:obs_dim + priv_dim + A]

    # --- env_mlp on priv_info (Linear + Tanh, Linear + Tanh) ---
    h = jnp.tanh(
        jnp.dot(priv, ew0_ref[...], preferred_element_type=f32) + eb0_ref[...]
    )
    extrin = jnp.tanh(
        jnp.dot(h, ew1_ref[...], preferred_element_type=f32) + eb1_ref[...]
    )

    # --- actor_mlp layer 0: split-weight dots instead of lane concat ---
    x = jnp.tanh(
        jnp.dot(obs, aw0o_ref[...], preferred_element_type=f32)
        + jnp.dot(extrin, aw0e_ref[...], preferred_element_type=f32)
        + ab0_ref[...]
    )
    # --- actor_mlp layer 1 ---
    x = jnp.tanh(
        jnp.dot(x, aw1_ref[...], preferred_element_type=f32) + ab1_ref[...]
    )

    # --- fused mu/value head: one MXU pass of width A+1 ---
    y = jnp.dot(x, hw_ref[...], preferred_element_type=f32) + hb_ref[...]
    mu = y[:, :A]
    value = y[:, A:A + 1]

    # --- Normal(mu, exp(logstd)) neglogp; logstd terms precomputed in wrapper ---
    inv_sigma = stat_ref[:, :A]          # exp(-logstd), batch-independent
    nlp_const = stat_ref[:, A:A + 1]     # sum(logstd) + 0.5*A*log(2*pi)
    z = (act - mu) * inv_sigma
    neglogp = 0.5 * jnp.sum(z * z, axis=-1, keepdims=True) + nlp_const

    # --- single packed output slab, disjoint static lane ranges ---
    out_ref[:, :A] = mu
    out_ref[:, A:A + E] = extrin
    out_ref[:, A + E:A + E + 1] = value
    out_ref[:, A + E + 1:A + E + 2] = neglogp


# ---------------------------------------------------------------------------
# One-time parameter preparation (hoisted out of the per-call forward path)
# ---------------------------------------------------------------------------
def prepare_kernel_params(params, obs_dim):
    f32 = jnp.float32
    A = params["mw"].shape[1]

    aw0_obs = params["aw0"][:obs_dim, :].astype(f32)
    aw0_ext = params["aw0"][obs_dim:, :].astype(f32)
    hw = jnp.concatenate([params["mw"], params["vw"]], axis=1).astype(f32)   # (U1a, A+1)
    hb = jnp.concatenate([params["mb"], params["vb"]], axis=1).astype(f32)   # (1,   A+1)

    logstd_row = params["sigma"][0].astype(f32)                              # (A,)
    inv_sigma = jnp.exp(-logstd_row)
    nlp_const = jnp.sum(logstd_row) + jnp.float32(0.5 * A * _LOG_2PI)
    stat = jnp.concatenate([inv_sigma, nlp_const[None]], axis=0)[None, :]    # (1, A+1)

    prep = {
        "weights": (
            params["ew0"].astype(f32), params["eb0"].astype(f32),
            params["ew1"].astype(f32), params["eb1"].astype(f32),
            aw0_obs, aw0_ext, params["ab0"].astype(f32),
            params["aw1"].astype(f32), params["ab1"].astype(f32),
            hw, hb, stat,
        ),
        "logstd_row": logstd_row,
        "A": A,
        "E": params["ew1"].shape[1],
        "obs_dim": obs_dim,
    }
    return prep


# ---------------------------------------------------------------------------
# Batch-tile picker: avoid padding, keep >= 2 grid steps when batch allows
# ---------------------------------------------------------------------------
def _pick_batch_tile(B, batch_tile):
    if B <= batch_tile:
        half = B // 2
        if half >= 8 and half % 8 == 0:
            return half, B          # 2 steps, no padding (v7x megacore friendly)
        return B, B                 # 1 step, block == full array (no (8,128) constraint)
    # large batch: largest multiple-of-8 divisor of B not exceeding min(tile, B//2)
    cap = min(batch_tile, B // 2)
    cap = max(8, (cap // 8) * 8)
    tb = cap
    while tb >= 8:
        if B % tb == 0:
            return tb, B
        tb -= 8
    # rare fallback: pad to a multiple of cap
    b_pad = ((B + cap - 1) // cap) * cap
    return cap, b_pad


# ---------------------------------------------------------------------------
# Wrapper
# ---------------------------------------------------------------------------
def actor_critic_forward(obs, priv, prev_actions, params=None, *, prep=None,
                         batch_tile=4096):
    f32 = jnp.float32
    B, obs_dim = obs.shape
    priv_dim = priv.shape[1]
    if prep is None:
        prep = prepare_kernel_params(params, obs_dim)
    A = prep["A"]
    E = prep["E"]
    weights = prep["weights"]
    U0e = weights[0].shape[1]   # ew0 out
    U0a = weights[4].shape[1]   # aw0 out
    U1a = weights[7].shape[1]   # aw1 out

    # --- pack the three batch-tiled inputs into one lane-dense slab ---
    xin = jnp.concatenate(
        [obs.astype(f32), priv.astype(f32), prev_actions.astype(f32)], axis=-1
    )
    D_in = obs_dim + priv_dim + A
    D_out = A + E + 2

    TB, B_pad = _pick_batch_tile(B, batch_tile)
    if B_pad != B:
        xin = jnp.pad(xin, ((0, B_pad - B), (0, 0)))
    grid = (B_pad // TB,)

    def batch_spec(feat):
        return pl.BlockSpec((TB, feat), lambda i: (i, 0))

    def resident_spec(arr):
        # full-array block, constant index -> loaded once, stays in VMEM
        return pl.BlockSpec(arr.shape, lambda i: (0, 0))

    in_specs = [batch_spec(D_in)] + [resident_spec(w) for w in weights]
    out_specs = batch_spec(D_out)
    out_shape = jax.ShapeDtypeStruct((B_pad, D_out), f32)

    flops = 2 * B_pad * (
        priv_dim * U0e + U0e * E + obs_dim * U0a + E * U0a + U0a * U1a + U1a * (A + 1)
    )
    transcendentals = B_pad * (U0e + E + U0a + U1a)
    weight_bytes = sum(int(w.size) * 4 for w in weights)
    bytes_accessed = 4 * B_pad * (D_in + D_out) + weight_bytes

    # per-step VMEM footprint (double-buffered I/O + activations + resident weights)
    act_width = U0e + E + U0a + U1a + (A + 1)
    per_step_bytes = 4 * TB * (2 * (D_in + D_out) + act_width) + weight_bytes
    compiler_kwargs = {"dimension_semantics": ("parallel",)}
    if per_step_bytes > 12 * 1024 * 1024:
        # keep very large tiles inside scoped VMEM (v5e default is only 16 MiB)
        compiler_kwargs["vmem_limit_bytes"] = int(
            min(2 * per_step_bytes, 60 * 1024 * 1024)
        )

    out_packed = pl.pallas_call(
        actor_critic_kernel,
        out_shape=out_shape,
        grid=grid,
        in_specs=in_specs,
        out_specs=out_specs,
        compiler_params=pltpu.CompilerParams(**compiler_kwargs),
        cost_estimate=pl.CostEstimate(
            flops=int(flops),
            transcendentals=int(transcendentals),
            bytes_accessed=int(bytes_accessed),
        ),
    )(xin, *weights)

    mu = out_packed[:B, :A]
    extrin = out_packed[:B, A:A + E]
    value = out_packed[:B, A + E:A + E + 1]
    neglogp = out_packed[:B, A + E + 1]

    # sigma / entropy are batch-independent broadcasts of the sigma parameter
    logstd_row = prep["logstd_row"]                       # (A,)
    sigma_row = jnp.exp(logstd_row)
    sigmas = jnp.broadcast_to(sigma_row, (B, A))
    entropy_scalar = jnp.sum(0.5 + 0.5 * _LOG_2PI + logstd_row)
    entropy = jnp.broadcast_to(entropy_scalar, (B,))

    return {
        "prev_neglogp": neglogp,     # torch.squeeze(prev_neglogp)
        "values": value,
        "entropy": entropy,
        "mus": mu,
        "sigmas": sigmas,
        "extrin": extrin,
        "extrin_gt": None,           # this config never populates extrin_gt
    }


# ---------------------------------------------------------------------------
# Deterministic parameter init (orthogonal weights, zero biases), like layer_init
# ---------------------------------------------------------------------------
def orthogonal(key, in_dim, out_dim, gain):
    n = max(in_dim, out_dim)
    a = jax.random.normal(key, (n, n), dtype=jnp.float32)
    q, r = jnp.linalg.qr(a)
    q = q * jnp.sign(jnp.diag(r))[None, :]
    return (gain * q[:in_dim, :out_dim]).astype(jnp.float32)


def make_params(key, obs_dim, priv_dim, priv_units, actor_units, actions_num):
    ks = jax.random.split(key, 8)
    gain = math.sqrt(2.0)
    p = {}
    # env_mlp: priv_dim -> priv_units[0] -> priv_units[1]
    p["ew0"] = orthogonal(ks[0], priv_dim, priv_units[0], gain)
    p["eb0"] = jnp.zeros((1, priv_units[0]), jnp.float32)
    p["ew1"] = orthogonal(ks[1], priv_units[0], priv_units[1], gain)
    p["eb1"] = jnp.zeros((1, priv_units[1]), jnp.float32)
    # actor_mlp: (obs_dim + priv_units[-1]) -> actor_units[0] -> actor_units[1]
    in0 = obs_dim + priv_units[-1]
    p["aw0"] = orthogonal(ks[2], in0, actor_units[0], gain)
    p["ab0"] = jnp.zeros((1, actor_units[0]), jnp.float32)
    p["aw1"] = orthogonal(ks[3], actor_units[0], actor_units[1], gain)
    p["ab1"] = jnp.zeros((1, actor_units[1]), jnp.float32)
    # heads
    p["mw"] = orthogonal(ks[4], actor_units[-1], actions_num, 0.01)
    p["mb"] = jnp.zeros((1, actions_num), jnp.float32)
    p["vw"] = orthogonal(ks[5], actor_units[-1], 1, 1.0)
    p["vb"] = jnp.zeros((1, 1), jnp.float32)
    # sigma parameter, initialized to 0 (nn.init.constant_(self.sigma, 0))
    p["sigma"] = jnp.zeros((1, actions_num), jnp.float32)
    return p


# ---------------------------------------------------------------------------
# Pure-JAX reference (matches PyTorch forward) for verification
# ---------------------------------------------------------------------------
def reference_forward(obs, priv, prev_actions, p):
    h = jnp.tanh(priv @ p["ew0"] + p["eb0"])
    extrin = jnp.tanh(h @ p["ew1"] + p["eb1"])
    obs_cat = jnp.concatenate([obs, extrin], axis=-1)
    x = jnp.tanh(obs_cat @ p["aw0"] + p["ab0"])
    x = jnp.tanh(x @ p["aw1"] + p["ab1"])
    mu = x @ p["mw"] + p["mb"]
    value = x @ p["vw"] + p["vb"]
    logstd = mu * 0 + p["sigma"]
    sigma = jnp.exp(logstd)
    entropy = jnp.sum(0.5 + 0.5 * _LOG_2PI + logstd, axis=-1)
    neglogp = jnp.sum(
        0.5 * ((prev_actions - mu) / sigma) ** 2 + logstd + 0.5 * _LOG_2PI, axis=-1
    )
    return mu, sigma, value, extrin, entropy, neglogp


if __name__ == "__main__":
    # Small config consistent with the module's kwargs
    B = 4                      # batch
    OBS_DIM = 32               # input_shape[0]
    PRIV_DIM = 24              # priv_info_dim
    PRIV_UNITS = [32, 16]      # priv_mlp_units
    ACTOR_UNITS = [64, 64]     # actor_units
    ACTIONS = 8                # actions_num

    key = jax.random.PRNGKey(0)
    k_obs, k_priv, k_act, k_par = jax.random.split(key, 4)

    obs = jax.random.normal(k_obs, (B, OBS_DIM), dtype=jnp.float32)
    priv = jax.random.normal(k_priv, (B, PRIV_DIM), dtype=jnp.float32)
    prev_actions = jax.random.normal(k_act, (B, ACTIONS), dtype=jnp.float32)

    params = make_params(k_par, OBS_DIM, PRIV_DIM, PRIV_UNITS, ACTOR_UNITS, ACTIONS)
    prep = prepare_kernel_params(params, OBS_DIM)   # one-time weight prep (cached)

    result = actor_critic_forward(obs, priv, prev_actions, prep=prep)
    jax.block_until_ready(result["mus"])

    # verify against pure-JAX reference
    mu_r, sigma_r, value_r, extrin_r, ent_r, nlp_r = reference_forward(
        obs, priv, prev_actions, params)
    assert jnp.allclose(result["mus"], mu_r, atol=1e-5), "mu mismatch"
    assert jnp.allclose(result["sigmas"], sigma_r, atol=1e-5), "sigma mismatch"
    assert jnp.allclose(result["values"], value_r, atol=1e-5), "value mismatch"
    assert jnp.allclose(result["extrin"], extrin_r, atol=1e-5), "extrin mismatch"
    assert jnp.allclose(result["entropy"], ent_r, atol=1e-4), "entropy mismatch"
    assert jnp.allclose(result["prev_neglogp"], nlp_r, atol=1e-4), "neglogp mismatch"

    print("KERNEL_OK")
</pallas_src>

<mosaic_0001>
module attributes {stable_mosaic.version = 11 : i64} {
  func.func @actor_critic_kernel(%arg0: i32, %arg1: memref<4x64xf32, #tpu.memory_space<vmem>>, %arg2: memref<24x32xf32, #tpu.memory_space<vmem>>, %arg3: memref<1x32xf32, #tpu.memory_space<vmem>>, %arg4: memref<32x16xf32, #tpu.memory_space<vmem>>, %arg5: memref<1x16xf32, #tpu.memory_space<vmem>>, %arg6: memref<32x64xf32, #tpu.memory_space<vmem>>, %arg7: memref<16x64xf32, #tpu.memory_space<vmem>>, %arg8: memref<1x64xf32, #tpu.memory_space<vmem>>, %arg9: memref<64x64xf32, #tpu.memory_space<vmem>>, %arg10: memref<1x64xf32, #tpu.memory_space<vmem>>, %arg11: memref<64x9xf32, #tpu.memory_space<vmem>>, %arg12: memref<1x9xf32, #tpu.memory_space<vmem>>, %arg13: memref<1x9xf32, #tpu.memory_space<vmem>>, %arg14: memref<4x26xf32, #tpu.memory_space<vmem>>) attributes {dimension_semantics = [#tpu.dimension_semantics<parallel>], iteration_bounds = array<i64: 1>, scalar_prefetch = 0 : i64, scratch_operands = 0 : i64, tpu.core_type = #tpu.core_type<tc>, window_params = [{transform_indices = @transform_0, window_bounds = array<i64: 4, 64>}, {pipeline_mode = #tpu.pipeline_mode<synchronous>, transform_indices = @transform_1, window_bounds = array<i64: 24, 32>}, {pipeline_mode = #tpu.pipeline_mode<synchronous>, transform_indices = @transform_2, window_bounds = array<i64: 1, 32>}, {pipeline_mode = #tpu.pipeline_mode<synchronous>, transform_indices = @transform_3, window_bounds = array<i64: 32, 16>}, {pipeline_mode = #tpu.pipeline_mode<synchronous>, transform_indices = @transform_4, window_bounds = array<i64: 1, 16>}, {pipeline_mode = #tpu.pipeline_mode<synchronous>, transform_indices = @transform_5, window_bounds = array<i64: 32, 64>}, {pipeline_mode = #tpu.pipeline_mode<synchronous>, transform_indices = @transform_6, window_bounds = array<i64: 16, 64>}, {pipeline_mode = #tpu.pipeline_mode<synchronous>, transform_indices = @transform_7, window_bounds = array<i64: 1, 64>}, {pipeline_mode = #tpu.pipeline_mode<synchronous>, transform_indices = @transform_8, window_bounds = array<i64: 64, 64>}, {pipeline_mode = #tpu.pipeline_mode<synchronous>, transform_indices = @transform_9, window_bounds = array<i64: 1, 64>}, {pipeline_mode = #tpu.pipeline_mode<synchronous>, transform_indices = @transform_10, window_bounds = array<i64: 64, 9>}, {pipeline_mode = #tpu.pipeline_mode<synchronous>, transform_indices = @transform_11, window_bounds = array<i64: 1, 9>}, {pipeline_mode = #tpu.pipeline_mode<synchronous>, transform_indices = @transform_12, window_bounds = array<i64: 1, 9>}, {transform_indices = @transform_13, window_bounds = array<i64: 4, 26>}]} {
    %c0 = arith.constant 0 : index
    %c0_0 = arith.constant 0 : index
    %0 = vector.load %arg1[%c0, %c0_0] : memref<4x64xf32, #tpu.memory_space<vmem>>, vector<4x64xf32>
    %1 = vector.extract_strided_slice %0 {offsets = [0, 0], sizes = [4, 32], strides = [1, 1]} : vector<4x64xf32> to vector<4x32xf32>
    %2 = vector.extract_strided_slice %0 {offsets = [0, 32], sizes = [4, 24], strides = [1, 1]} : vector<4x64xf32> to vector<4x24xf32>
    %3 = vector.extract_strided_slice %0 {offsets = [0, 56], sizes = [4, 8], strides = [1, 1]} : vector<4x64xf32> to vector<4x8xf32>
    %c0_1 = arith.constant 0 : index
    %c0_2 = arith.constant 0 : index
    %4 = vector.load %arg2[%c0_1, %c0_2] : memref<24x32xf32, #tpu.memory_space<vmem>>, vector<24x32xf32>
    %cst = arith.constant dense<0.000000e+00> : vector<4x32xf32>
    %5 = tpu.matmul %2, %4, %cst {dimension_numbers = #tpu.dot_dimension_numbers<[1], [0], [0], [1], [0, 0, 1, 1], [], []>} : vector<4x24xf32>, vector<24x32xf32>, vector<4x32xf32> -> vector<4x32xf32>
    %c0_3 = arith.constant 0 : index
    %c0_4 = arith.constant 0 : index
    %6 = vector.load %arg3[%c0_3, %c0_4] : memref<1x32xf32, #tpu.memory_space<vmem>>, vector<1x32xf32>
    %7 = vector.broadcast %6 : vector<1x32xf32> to vector<4x32xf32>
    %8 = arith.addf %5, %7 : vector<4x32xf32>
    %9 = math.tanh %8 : vector<4x32xf32>
    %c0_5 = arith.constant 0 : index
    %c0_6 = arith.constant 0 : index
    %10 = vector.load %arg4[%c0_5, %c0_6] : memref<32x16xf32, #tpu.memory_space<vmem>>, vector<32x16xf32>
    %cst_7 = arith.constant dense<0.000000e+00> : vector<4x16xf32>
    %11 = tpu.matmul %9, %10, %cst_7 {dimension_numbers = #tpu.dot_dimension_numbers<[1], [0], [0], [1], [0, 0, 1, 1], [], []>} : vector<4x32xf32>, vector<32x16xf32>, vector<4x16xf32> -> vector<4x16xf32>
    %c0_8 = arith.constant 0 : index
    %c0_9 = arith.constant 0 : index
    %12 = vector.load %arg5[%c0_8, %c0_9] : memref<1x16xf32, #tpu.memory_space<vmem>>, vector<1x16xf32>
    %13 = vector.broadcast %12 : vector<1x16xf32> to vector<4x16xf32>
    %14 = arith.addf %11, %13 : vector<4x16xf32>
    %15 = math.tanh %14 : vector<4x16xf32>
    %c0_10 = arith.constant 0 : index
    %c0_11 = arith.constant 0 : index
    %16 = vector.load %arg6[%c0_10, %c0_11] : memref<32x64xf32, #tpu.memory_space<vmem>>, vector<32x64xf32>
    %cst_12 = arith.constant dense<0.000000e+00> : vector<4x64xf32>
    %17 = tpu.matmul %1, %16, %cst_12 {dimension_numbers = #tpu.dot_dimension_numbers<[1], [0], [0], [1], [0, 0, 1, 1], [], []>} : vector<4x32xf32>, vector<32x64xf32>, vector<4x64xf32> -> vector<4x64xf32>
    %c0_13 = arith.constant 0 : index
    %c0_14 = arith.constant 0 : index
    %18 = vector.load %arg7[%c0_13, %c0_14] : memref<16x64xf32, #tpu.memory_space<vmem>>, vector<16x64xf32>
    %cst_15 = arith.constant dense<0.000000e+00> : vector<4x64xf32>
    %19 = tpu.matmul %15, %18, %cst_15 {dimension_numbers = #tpu.dot_dimension_numbers<[1], [0], [0], [1], [0, 0, 1, 1], [], []>} : vector<4x16xf32>, vector<16x64xf32>, vector<4x64xf32> -> vector<4x64xf32>
    %20 = arith.addf %17, %19 : vector<4x64xf32>
    %c0_16 = arith.constant 0 : index
    %c0_17 = arith.constant 0 : index
    %21 = vector.load %arg8[%c0_16, %c0_17] : memref<1x64xf32, #tpu.memory_space<vmem>>, vector<1x64xf32>
    %22 = vector.broadcast %21 : vector<1x64xf32> to vector<4x64xf32>
    %23 = arith.addf %20, %22 : vector<4x64xf32>
    %24 = math.tanh %23 : vector<4x64xf32>
    %c0_18 = arith.constant 0 : index
    %c0_19 = arith.constant 0 : index
    %25 = vector.load %arg9[%c0_18, %c0_19] : memref<64x64xf32, #tpu.memory_space<vmem>>, vector<64x64xf32>
    %cst_20 = arith.constant dense<0.000000e+00> : vector<4x64xf32>
    %26 = tpu.matmul %24, %25, %cst_20 {dimension_numbers = #tpu.dot_dimension_numbers<[1], [0], [0], [1], [0, 0, 1, 1], [], []>} : vector<4x64xf32>, vector<64x64xf32>, vector<4x64xf32> -> vector<4x64xf32>
    %c0_21 = arith.constant 0 : index
    %c0_22 = arith.constant 0 : index
    %27 = vector.load %arg10[%c0_21, %c0_22] : memref<1x64xf32, #tpu.memory_space<vmem>>, vector<1x64xf32>
    %28 = vector.broadcast %27 : vector<1x64xf32> to vector<4x64xf32>
    %29 = arith.addf %26, %28 : vector<4x64xf32>
    %30 = math.tanh %29 : vector<4x64xf32>
    %c0_23 = arith.constant 0 : index
    %c0_24 = arith.constant 0 : index
    %31 = vector.load %arg11[%c0_23, %c0_24] : memref<64x9xf32, #tpu.memory_space<vmem>>, vector<64x9xf32>
    %cst_25 = arith.constant dense<0.000000e+00> : vector<4x9xf32>
    %32 = tpu.matmul %30, %31, %cst_25 {dimension_numbers = #tpu.dot_dimension_numbers<[1], [0], [0], [1], [0, 0, 1, 1], [], []>} : vector<4x64xf32>, vector<64x9xf32>, vector<4x9xf32> -> vector<4x9xf32>
    %c0_26 = arith.constant 0 : index
    %c0_27 = arith.constant 0 : index
    %33 = vector.load %arg12[%c0_26, %c0_27] : memref<1x9xf32, #tpu.memory_space<vmem>>, vector<1x9xf32>
    %34 = vector.broadcast %33 : vector<1x9xf32> to vector<4x9xf32>
    %35 = arith.addf %32, %34 : vector<4x9xf32>
    %36 = vector.extract_strided_slice %35 {offsets = [0, 0], sizes = [4, 8], strides = [1, 1]} : vector<4x9xf32> to vector<4x8xf32>
    %37 = vector.extract_strided_slice %35 {offsets = [0, 8], sizes = [4, 1], strides = [1, 1]} : vector<4x9xf32> to vector<4x1xf32>
    %c0_28 = arith.constant 0 : index
    %c0_29 = arith.constant 0 : index
    %38 = vector.load %arg13[%c0_28, %c0_29] : memref<1x9xf32, #tpu.memory_space<vmem>>, vector<1x8xf32>
    %c0_30 = arith.constant 0 : index
    %c8 = arith.constant 8 : index
    %39 = vector.load %arg13[%c0_30, %c8] : memref<1x9xf32, #tpu.memory_space<vmem>>, vector<1x1xf32>
    %40 = arith.subf %3, %36 : vector<4x8xf32>
    %41 = vector.broadcast %38 : vector<1x8xf32> to vector<4x8xf32>
    %42 = arith.mulf %40, %41 : vector<4x8xf32>
    %43 = arith.mulf %42, %42 : vector<4x8xf32>
    %cst_31 = arith.constant dense<0.000000e+00> : vector<4xf32>
    %44 = vector.multi_reduction <add>, %43, %cst_31 [1] : vector<4x8xf32> to vector<4xf32>
    %45 = vector.shape_cast %44 : vector<4xf32> to vector<4x1xf32>
    %cst_32 = arith.constant 5.000000e-01 : f32
    %46 = vector.broadcast %cst_32 : f32 to vector<4x1xf32>
    %47 = arith.mulf %46, %45 : vector<4x1xf32>
    %48 = vector.broadcast %39 : vector<1x1xf32> to vector<4x1xf32>
    %49 = arith.addf %47, %48 : vector<4x1xf32>
    %c0_33 = arith.constant 0 : index
    %c0_34 = arith.constant 0 : index
    %50 = vector.load %arg14[%c0_33, %c0_34] : memref<4x26xf32, #tpu.memory_space<vmem>>, vector<4x8xf32>
    tpu.vector_store %arg14[%c0_33, %c0_34], %36 {strides = array<i32>} : memref<4x26xf32, #tpu.memory_space<vmem>>, vector<4x8xf32>,
    %c0_35 = arith.constant 0 : index
    %c8_36 = arith.constant 8 : index
    %51 = vector.load %arg14[%c0_35, %c8_36] : memref<4x26xf32, #tpu.memory_space<vmem>>, vector<4x16xf32>
    tpu.vector_store %arg14[%c0_35, %c8_36], %15 {strides = array<i32>} : memref<4x26xf32, #tpu.memory_space<vmem>>, vector<4x16xf32>,
    %c0_37 = arith.constant 0 : index
    %c24 = arith.constant 24 : index
    %52 = vector.load %arg14[%c0_37, %c24] : memref<4x26xf32, #tpu.memory_space<vmem>>, vector<4x1xf32>
    tpu.vector_store %arg14[%c0_37, %c24], %37 {strides = array<i32>} : memref<4x26xf32, #tpu.memory_space<vmem>>, vector<4x1xf32>,
    %c0_38 = arith.constant 0 : index
    %c25 = arith.constant 25 : index
    %53 = vector.load %arg14[%c0_38, %c25] : memref<4x26xf32, #tpu.memory_space<vmem>>, vector<4x1xf32>
    tpu.vector_store %arg14[%c0_38, %c25], %49 {strides = array<i32>} : memref<4x26xf32, #tpu.memory_space<vmem>>, vector<4x1xf32>,
    return
  }
  func.func @transform_0(%arg0: i32) -> (i32, i32) {
    %c0_i32 = arith.constant 0 : i32
    %c0_i32_0 = arith.constant 0 : i32
    return %arg0, %c0_i32 : i32, i32
  }
  func.func @transform_1(%arg0: i32) -> (i32, i32) {
    %c0_i32 = arith.constant 0 : i32
    %c0_i32_0 = arith.constant 0 : i32
    %c0_i32_1 = arith.constant 0 : i32
    return %c0_i32, %c0_i32_0 : i32, i32
  }
  func.func @transform_2(%arg0: i32) -> (i32, i32) {
    %c0_i32 = arith.constant 0 : i32
    %c0_i32_0 = arith.constant 0 : i32
    %c0_i32_1 = arith.constant 0 : i32
    return %c0_i32, %c0_i32_0 : i32, i32
  }
  func.func @transform_3(%arg0: i32) -> (i32, i32) {
    %c0_i32 = arith.constant 0 : i32
    %c0_i32_0 = arith.constant 0 : i32
    %c0_i32_1 = arith.constant 0 : i32
    return %c0_i32, %c0_i32_0 : i32, i32
  }
  func.func @transform_4(%arg0: i32) -> (i32, i32) {
    %c0_i32 = arith.constant 0 : i32
    %c0_i32_0 = arith.constant 0 : i32
    %c0_i32_1 = arith.constant 0 : i32
    return %c0_i32, %c0_i32_0 : i32, i32
  }
  func.func @transform_5(%arg0: i32) -> (i32, i32) {
    %c0_i32 = arith.constant 0 : i32
    %c0_i32_0 = arith.constant 0 : i32
    %c0_i32_1 = arith.constant 0 : i32
    return %c0_i32, %c0_i32_0 : i32, i32
  }
  func.func @transform_6(%arg0: i32) -> (i32, i32) {
    %c0_i32 = arith.constant 0 : i32
    %c0_i32_0 = arith.constant 0 : i32
    %c0_i32_1 = arith.constant 0 : i32
    return %c0_i32, %c0_i32_0 : i32, i32
  }
  func.func @transform_7(%arg0: i32) -> (i32, i32) {
    %c0_i32 = arith.constant 0 : i32
    %c0_i32_0 = arith.constant 0 : i32
    %c0_i32_1 = arith.constant 0 : i32
    return %c0_i32, %c0_i32_0 : i32, i32
  }
  func.func @transform_8(%arg0: i32) -> (i32, i32) {
    %c0_i32 = arith.constant 0 : i32
    %c0_i32_0 = arith.constant 0 : i32
    %c0_i32_1 = arith.constant 0 : i32
    return %c0_i32, %c0_i32_0 : i32, i32
  }
  func.func @transform_9(%arg0: i32) -> (i32, i32) {
    %c0_i32 = arith.constant 0 : i32
    %c0_i32_0 = arith.constant 0 : i32
    %c0_i32_1 = arith.constant 0 : i32
    return %c0_i32, %c0_i32_0 : i32, i32
  }
  func.func @transform_10(%arg0: i32) -> (i32, i32) {
    %c0_i32 = arith.constant 0 : i32
    %c0_i32_0 = arith.constant 0 : i32
    %c0_i32_1 = arith.constant 0 : i32
    return %c0_i32, %c0_i32_0 : i32, i32
  }
  func.func @transform_11(%arg0: i32) -> (i32, i32) {
    %c0_i32 = arith.constant 0 : i32
    %c0_i32_0 = arith.constant 0 : i32
    %c0_i32_1 = arith.constant 0 : i32
    return %c0_i32, %c0_i32_0 : i32, i32
  }
  func.func @transform_12(%arg0: i32) -> (i32, i32) {
    %c0_i32 = arith.constant 0 : i32
    %c0_i32_0 = arith.constant 0 : i32
    %c0_i32_1 = arith.constant 0 : i32
    return %c0_i32, %c0_i32_0 : i32, i32
  }
  func.func @transform_13(%arg0: i32) -> (i32, i32) {
    %c0_i32 = arith.constant 0 : i32
    %c0_i32_0 = arith.constant 0 : i32
    return %arg0, %c0_i32 : i32, i32
  }
}

</mosaic_0001>

<bundles_post_ra>
// kernel: tpu_custom_call.1
= control target key start
LH: loop header
LB: loop body
LE: loop exit
PB: predicated region body
PF: predicated region fallthrough
CT: control target
= control target key end

     0   :  { %18 = vsyncpa [#allocation3], 0  ;;  %s1171_s0 = inlined_call_operand.hbm [shape: f32[4,64], index: 0, kind: input, shape index: {}]   ;;  %s1172_s1 = inlined_call_operand.vmem [shape: f32[24,32], index: 1, kind: input, shape index: {}]   ;;  %s1173_s2 = inlined_call_operand.vmem [shape: f32[1,32], index: 2, kind: input, shape index: {}]   ;;  %s1174_s3 = inlined_call_operand.vmem [shape: f32[32,16], index: 3, kind: input, shape index: {}]   ;;  %s1175_s4 = inlined_call_operand.vmem [shape: f32[1,16], index: 4, kind: input, shape index: {}]   ;;  %s1176_s5 = inlined_call_operand.vmem [shape: f32[32,64], index: 5, kind: input, shape index: {}]   ;;  %s1177_s6 = inlined_call_operand.hbm [shape: f32[16,64], index: 6, kind: input, shape index: {}]   ;;  %s1178_s7 = inlined_call_operand.vmem [shape: f32[1,64], index: 7, kind: input, shape index: {}]   ;;  %s1179_s8 = inlined_call_operand.vmem [shape: f32[64,64], index: 8, kind: input, shape index: {}]   ;;  %s1180_s9 = inlined_call_operand.vmem [shape: f32[1,64], index: 9, kind: input, shape index: {}]   ;;  %s1181_s10 = inlined_call_operand.vmem [shape: f32[64,9], index: 10, kind: input, shape index: {}]   ;;  %s1182_s11 = inlined_call_operand.vmem [shape: f32[1,9], index: 11, kind: input, shape index: {}]   ;;  %s1183_s12 = inlined_call_operand.vmem [shape: f32[1,9], index: 12, kind: input, shape index: {}]   ;;  %s1184_s13 = inlined_call_operand.hbm [shape: f32[4,26], index: 13, kind: output, shape index: {}]  }
   0x1   :  { %19 = vsyncpa [#allocation6], 0 }
   0x2   :  { %20 = vsyncpa [#allocation4], 0  ;;  %s902_s25 = smov [#allocation2]   ;;  %s903_s27 = smov [#allocation5]  }
   0x3   :  { %s27_s26 = sshll.u32 %s902_s25, 4  ;;  %s46_s28 = sshll.u32 %s903_s27, 4  ;;  %s28_s26 = int_to_ptr.vmem [resolvable:$true] %s27_s26  ;;  %s985_s28 = int_to_ptr.vmem [resolvable:$true] %s46_s28 }
   0x4   :  { %s830_s14 = scalar_lea.hbm %s1171_s0, 64 }
   0x5   :  { %p831_p0 = scmp.ne.s32.totalorder %s1171_s0, %s830_s14  ;;  %p834_p1 = scmp.lt.u32.totalorder %s830_s14, %s1171_s0 }
   0x7   :  { %p836_p2 = pnand %p834_p1, %p831_p0 }
   0x9   :  { %839 = shalt.err (!%p836_p2)
}
   0xa   :  { %s840_s19 = scalar_lea.vmem %s28_s26, 64  ;;  %p845_p4 = scmp.lt.s32.totalorder %s28_s26, %s28_s26 }
   0xb   :  { %p841_p3 = scmp.ne.s32.totalorder %s28_s26, %s840_s19  ;;  %p846_p5 = scmp.lt.s32.totalorder %s840_s19, %s840_s19 }
   0xd   :  { %p847_p6 = por %p846_p5, %p845_p4 }
   0xf   :  { %p848_p7 = pnand %p847_p6, %p841_p3 }
  0x11   :  { %851 = shalt.err (!%p848_p7)
}
  0x12   :  { %30 = dma.hbm_to_vmem [thread:$0]  %s1171_s0, 64, %s28_s26, [#allocation3]  }
  0x13   :  { %s852_s24 = scalar_lea.hbm %s1177_s6, 256 }
  0x14   :  { %p853_p8 = scmp.ne.s32.totalorder %s1177_s6, %s852_s24  ;;  %p856_p9 = scmp.lt.u32.totalorder %s852_s24, %s1177_s6 }
  0x16   :  { %p858_p10 = pnand %p856_p9, %p853_p8 }
  0x18   :  { %861 = shalt.err (!%p858_p10)
}
  0x19   :  { %s862_s14 = scalar_lea.vmem %s985_s28, 256  ;;  %p867_p12 = scmp.lt.s32.totalorder %s985_s28, %s985_s28 }
  0x1a   :  { %p863_p11 = scmp.ne.s32.totalorder %s985_s28, %s862_s14  ;;  %p868_p13 = scmp.lt.s32.totalorder %s862_s14, %s862_s14 }
  0x1c   :  { %p869_p0 = por %p868_p13, %p867_p12 }
  0x1e   :  { %p870_p1 = pnand %p869_p0, %p863_p11 }
  0x20   :  { %873 = shalt.err (!%p870_p1)
}
  0x21   :  { %s904_s0 = smov 128   ;;  %s905_s26 = smov 8  }
  0x22   :  { %52 = dma.hbm_to_vmem [thread:$0]  %s1177_s6, 256, %s985_s28, [#allocation6], %s904_s0, %s904_s0, %s905_s26  }
  0x23   :  { %896 = dma.done.wait [#allocation3], 64  }
  0x24   :  { %897 = vsyncadd [#allocation3], 4294967232 }
  0x25   :  { %898 = dma.done.wait [#allocation6], 256  }
  0x26   :  { %899 = vsyncadd [#allocation6], 4294967040  ;;  %v906_v0 = vmov 0.0|0.0   ;;  %vm907_vm0 = vmmov 0   ;;  %v908_v1 = vmov 0.0   ;;  %v72_v3 = vld [vmem:[%s1172_s1] sm:$0xff] }
  0x27   :  { %767 = vmatprep.subr.bf16.mxu0 %v906_v0  ;;  %697 = vmatprep.mubr.msk.f32.mxu0 %vm907_vm0, %v908_v1  ;;  %v1023_v2 = vld [vmem:[#allocation2] sm:$0xf]  ;;  %v73_v4 = vld [vmem:[%s1172_s1 + $0x8] sm:$0xff]  ;;  %s909_s19 = smov 96   ;;  %v74_v6 = vld [vmem:[%s1172_s1 + $0x10] sm:$0xff]  ;;  %vm85_vm1 = vcmask 195584  }
  0x28   :  { %770 = vmatprep.subr.bf16.mxu1 %v906_v0  ;;  %708 = vmatprep.mubr.msk.f32.mxu1 %vm907_vm0, %v908_v1  ;;  %v768_v5 = vpack.c.bf16 %v73_v4, %v72_v3  ;;  %v159_v8 = vld [vmem:[%s1174_s3] sm:$0xff]  ;;  %v160_v9 = vld [vmem:[%s1174_s3 + $0x8] sm:$0xff]  ;;  %v161_v10 = vld [vmem:[%s1174_s3 + $0x10] sm:$0xff]  ;;  %vm170_vm2 = vcmask 261120   ;;  %vm251_vm3 = vcmask 130048   ;;  %vm421_vm4 = vcmask 523264  }
  0x29   :  { %83 = vrot.lane.b32.xlu0 %v1023_v2, %s909_s19  ;;  %v771_v11 = vpack.c.bf16 %v160_v9, %v159_v8  ;;  %v162_v12 = vld [vmem:[%s1174_s3 + $0x18] sm:$0xff]  ;;  %v644_v14 = vld [vmem:[%s1173_s2] ss:$0 sm:$0xff]  ;;  %v246_v20 = vld [vmem:[%s1176_s5 + $0x8] sm:$0xff]  ;;  %vm604_vm5 = vcmask 60416   ;;  %vm615_vm6 = vcmask 191552  }
  0x2a   :  { %769 = vmatpush3.bf16.msra.mxu0 %v768_v5  ;;  %v774_v13 = vpack.c.bf16 %v162_v12, %v161_v10  ;;  %v245_v19 = vld [vmem:[%s1176_s5] sm:$0xff]  ;;  %v250_v23 = vld [vmem:[#allocation5 + $0x8] sm:$0xff]  ;;  %v248_v25 = vld [vmem:[%s1176_s5 + $0x18] sm:$0xff]  ;;  %vm620_vm7 = vcmask 199872   ;;  %s914_s16 = smov [#allocation7]   ;;  %vm626_vm8 = vcmask 208072  }
  0x2b   :  { %695 = vmatprep.subr.mxu0 %v908_v1  ;;  %772 = vmatpush3.bf16.msra.mxu1 %v771_v11  ;;  %v249_v21 = vld [vmem:[#allocation5] sm:$0xff]  ;;  %v780_v22 = vpack.c.bf16 %v246_v20, %v245_v19  ;;  %v247_v24 = vld [vmem:[%s1176_s5 + $0x10] sm:$0xff]  ;;  %v646_v28 = vld [vmem:[%s1175_s4] ss:$0 sm:$0xff]  ;;  %s634_s6 = sshll.u32 %s914_s16, 4  ;;  %s635_s6 = int_to_ptr.vmem [resolvable:$true] %s634_s6 }
  0x2c   :  { %773 = vmatprep.subr.bf16.mxu1 %v906_v0  ;;  %v777_v26 = vpack.c.bf16 %v250_v23, %v249_v21  ;;  %v783_v27 = vpack.c.bf16 %v248_v25, %v247_v24  ;;  %v406_v33 = vld [vmem:[%s1179_s8] sm:$0xff]  ;;  %v407_v34 = vld [vmem:[%s1179_s8 + $0x8] sm:$0xff]  ;;  %v408_v38 = vld [vmem:[%s1179_s8 + $0x10] sm:$0xff]  ;;  %p879_p3 = scmp.lt.s32.totalorder %s635_s6, %s635_s6 }
  0x2d   :  { %v786_v36 = vpack.c.bf16 %v407_v34, %v406_v33  ;;  %v409_v39 = vld [vmem:[%s1179_s8 + $0x18] sm:$0xff]  ;;  %v410_v41 = vld [vmem:[%s1179_s8 + $0x20] sm:$0xff]  ;;  %v411_v42 = vld [vmem:[%s1179_s8 + $0x28] sm:$0xff] }
  0x2e   :  { %696 = vmatpush3.msra.mxu0 %v74_v6  ;;  %v789_v40 = vpack.c.bf16 %v409_v39, %v408_v38  ;;  %v792_v43 = vpack.c.bf16 %v411_v42, %v410_v41  ;;  %v412_v44 = vld [vmem:[%s1179_s8 + $0x30] sm:$0xff]  ;;  %v413_v45 = vld [vmem:[%s1179_s8 + $0x38] sm:$0xff]  ;;  %v496_v47 = vld [vmem:[%s1181_s10] sm:$0xff] }
  0x2f   :  { %776 = vmatprep.subr.bf16.mxu0 %v906_v0  ;;  %775 = vmatpush3.bf16.msra.mxu1 %v774_v13  ;;  %v795_v46 = vpack.c.bf16 %v413_v45, %v412_v44  ;;  %v497_v48 = vld [vmem:[%s1181_s10 + $0x8] sm:$0xff]  ;;  %v650_v51 = vld [vmem:[%s1178_s7] ss:$0 sm:$0xff]  ;;  %v498_v56 = vld [vmem:[%s1181_s10 + $0x10] sm:$0xff] }
  0x30   :  { %779 = vmatprep.subr.bf16.mxu1 %v906_v0  ;;  %v798_v49 = vpack.c.bf16 %v497_v48, %v496_v47  ;;  %v499_v57 = vld [vmem:[%s1181_s10 + $0x18] sm:$0xff]  ;;  %v500_v59 = vld [vmem:[%s1181_s10 + $0x20] sm:$0xff]  ;;  %v501_v60 = vld [vmem:[%s1181_s10 + $0x28] sm:$0xff] }
  0x31   :  { %v801_v58 = vpack.c.bf16 %v499_v57, %v498_v56  ;;  %v804_v61 = vpack.c.bf16 %v501_v60, %v500_v59  ;;  %v502_v62 = vld [vmem:[%s1181_s10 + $0x30] sm:$0xff]  ;;  %v503_v63 = vld [vmem:[%s1181_s10 + $0x38] sm:$0xff]  ;;  %v651_v3 = vld [vmem:[%s1180_s9] ss:$0 sm:$0xff]  ;;  %s910_s10 = smov 56   ;;  %s911_s9 = smov 72  }
  0x32   :  { %v655_v8 = vld [vmem:[%s1183_s12] ss:$0 sm:$0xff]  ;;  %s912_s12 = smov 16  }
  0x33   :  { %595 = vrot.lane.b32.xlu1 %v655_v8, %s910_s10 }
  0x9b   :  { %v84_v7 = vpop.permute.xlu0 %83 }
  0x9c   :  { %698 = vmatmul.mubr.msk.f32.vlgmr.msra.gmra.mrb[0].mxu0 %vm85_vm1, %v84_v7 }
  0x9d   :  { %715 = vmatprep.mubr.msk.f32.mxu0 %vm907_vm0, %v908_v1  ;;  %778 = vmatpush3.bf16.msra.mxu0 %v777_v26 }
  0x9e   :  { %785 = vmatprep.subr.bf16.mxu0 %v906_v0 }
  0xa5   :  { %v596_v13 = vpop.permute.xlu1 %595 }
 0x16f   :  { %v154_v15 = vpop.f32.mrb[0].mxu0 }
 0x170   :  { %v155_v16 = vadd.f32 %v644_v14, %v154_v15  ;;  %v699_v17 = vpop.f32.mrb[1].mxu0 }
 0x172   :  { %822 = vtanh.f32 %v155_v16 }
 0x17c   :  { %v823_v18 = vpop.eup %822 }
 0x17d   :  { %709 = vmatmul.mubr.msk.f32.vlgmr.msra.gmra.mrb[0].mxu1 %vm170_vm2, %v823_v18 }
 0x17e   :  { %726 = vmatprep.mubr.msk.f32.mxu1 %vm907_vm0, %v908_v1  ;;  %781 = vmatpush3.bf16.msra.mxu1 %v780_v22 }
 0x17f   :  { %782 = vmatprep.subr.bf16.mxu1 %v906_v0 }
 0x182   :  { %784 = vmatpush3.bf16.msra.mxu1 %v783_v27 }
 0x183   :  { %797 = vmatprep.subr.bf16.mxu1 %v906_v0 }
 0x185   :  { %727 = vmatmul.mubr.msk.f32.vlgmr.msra.gmra.mrb[2].mxu1 %vm170_vm2, %v1023_v2 }
 0x186   :  { %764 = vmatprep.mubr.msk.f32.mxu1 %vm907_vm0, %v908_v1  ;;  %799 = vmatpush3.bf16.msra.mxu1 %v798_v49 }
 0x187   :  { %800 = vmatprep.subr.bf16.mxu1 %v906_v0 }
 0x18a   :  { %802 = vmatpush3.bf16.msra.mxu1 %v801_v58 }
 0x18b   :  { %803 = vmatprep.subr.bf16.mxu1 %v906_v0 }
 0x18e   :  { %805 = vmatpush3.bf16.msra.mxu1 %v804_v61 }
 0x18f   :  { %806 = vmatprep.subr.bf16.mxu1 %v906_v0 }
 0x250   :  { %v240_v29 = vpop.f32.mrb[0].mxu1 }
 0x251   :  { %v241_v30 = vadd.f32 %v646_v28, %v240_v29  ;;  %v710_v31 = vpop.f32.mrb[1].mxu1 }
 0x253   :  { %824 = vtanh.f32 %v241_v30 }
 0x258   :  { %v393_v35 = vpop.f32.mrb[2].mxu1 }
 0x259   :  { %v728_v37 = vpop.f32.mrb[3].mxu1 }
 0x25d   :  { %v1081_v32 = vpop.eup %824 }
 0x25e   :  { %716 = vmatmul.mubr.msk.f32.vlgmr.msra.gmra.mrb[2].mxu0 %vm251_vm3, %v1081_v32 }
 0x25f   :  { %745 = vmatprep.mubr.msk.f32.mxu0 %vm907_vm0, %v908_v1  ;;  %787 = vmatpush3.bf16.msra.mxu0 %v786_v36  ;;  %v807_v1 = vpack.c.bf16 %v503_v63, %v502_v62 }
 0x260   :  { %788 = vmatprep.subr.bf16.mxu0 %v906_v0 }
 0x261   :  { %808 = vmatpush3.bf16.msra.mxu1 %v807_v1 }
 0x263   :  { %790 = vmatpush3.bf16.msra.mxu0 %v789_v40 }
 0x264   :  { %791 = vmatprep.subr.bf16.mxu0 %v906_v0 }
 0x267   :  { %793 = vmatpush3.bf16.msra.mxu0 %v792_v43 }
 0x268   :  { %794 = vmatprep.subr.bf16.mxu0 %v906_v0  ;;  %v653_v0 = vld [vmem:[%s1182_s11] ss:$0 sm:$0xff]  ;;  %s913_s11 = smov 17  }
 0x26b   :  { %796 = vmatpush3.bf16.msra.mxu0 %v795_v46 }
 0x331   :  { %v321_v50 = vpop.f32.mrb[2].mxu0 }
 0x332   :  { %v394_v52 = vadd.f32 %v393_v35, %v321_v50  ;;  %v717_v53 = vpop.f32.mrb[3].mxu0 }
 0x334   :  { %v404_v54 = vadd.f32 %v650_v51, %v394_v52 }
 0x336   :  { %826 = vtanh.f32 %v404_v54 }
 0x340   :  { %v827_v55 = vpop.eup %826 }
 0x341   :  { %746 = vmatmul.mubr.msk.f32.vlgmr.msra.gmra.mrb[4].mxu0 %vm421_vm4, %v827_v55 }
 0x414   :  { %v491_v4 = vpop.f32.mrb[4].mxu0 }
 0x415   :  { %v492_v5 = vadd.f32 %v651_v3, %v491_v4  ;;  %v747_v6 = vpop.f32.mrb[5].mxu0 }
 0x417   :  { %828 = vtanh.f32 %v492_v5 }
 0x421   :  { %v829_v7 = vpop.eup %828 }
 0x422   :  { %765 = vmatmul.mubr.msk.f32.vlgmr.msra.gmra.mrb[4].mxu1 %vm421_vm4, %v829_v7 }
 0x4f5   :  { %v580_v9 = vpop.f32.mrb[4].mxu1 }
 0x4f6   :  { %v581_v10 = vadd.f32 %v653_v0, %v580_v9  ;;  %v766_v11 = vpop.f32.mrb[5].mxu1 }
 0x4f8   :  { %586 = vrot.lane.b32.xlu0 %v581_v10, %s910_s10  ;;  %611 = vst.msk [vmem:[#allocation7] sm:$0xf] %vm604_vm5, %v581_v10 }
 0x56a   :  { %v587_v12 = vpop.permute.xlu0 %586 }
 0x56b   :  { %v589_v14 = vsub.f32 %v1023_v2, %v587_v12 }
 0x56d   :  { %v598_v15 = vmul.f32 %v596_v13, %v589_v14 }
 0x56f   :  { %v599_v16 = vmul.f32 %v598_v15, %v598_v15 }
 0x571   :  { %601 = vrot.lane.b32.xlu1 %v599_v16, %s911_s9 }
 0x575   :  { %612 = vrot.lane.b32.xlu1 %v1081_v32, %s905_s26  ;;  %s874_s26 = scalar_lea.vmem %s635_s6, 64 }
 0x576   :  { %p875_p2 = scmp.ne.s32.totalorder %s635_s6, %s874_s26  ;;  %p880_p4 = scmp.lt.s32.totalorder %s874_s26, %s874_s26 }
 0x578   :  { %p881_p5 = por %p880_p4, %p879_p3 }
 0x579   :  { %617 = vrot.lane.b32.xlu1 %v581_v10, %s912_s12 }
 0x57a   :  { %p882_p6 = pnand %p881_p5, %p875_p2 }
 0x5e3   :  { %v602_v17 = vpop.permute.xlu1 %601 }
 0x5e4   :  { %v605_v18 = vsel %vm604_vm5, %v602_v17, 0.0 }
 0x5e5   :  { %606 = vadd.xlane.f32.xlu0 %v605_v18 }
 0x5e7   :  { %v613_v19 = vpop.permute.xlu1 %612 }
 0x5e8   :  { %616 = vst.msk [vmem:[#allocation7] sm:$0xf] %vm615_vm6, %v613_v19 }
 0x5eb   :  { %v618_v20 = vpop.permute.xlu1 %617 }
 0x5ec   :  { %621 = vst.msk [vmem:[#allocation7] sm:$0xf] %vm620_vm7, %v618_v20 }
 0x672   :  { %v607_v2 = vpop.xlane.xlu0 %606 }
 0x673   :  { %v608_v21 = vmul.f32 0.5, %v607_v2 }
 0x675   :  { %v610_v22 = vadd.f32 %v655_v8, %v608_v21 }
 0x677   :  { %623 = vrot.lane.b32.xlu1 %v610_v22, %s913_s11 }
 0x6e9   :  { %v624_v23 = vpop.permute.xlu1 %623 }
 0x6ea   :  { %627 = vst.msk [vmem:[#allocation7] sm:$0xf] %vm626_vm8, %v624_v23 }
 0x6eb   :  { %885 = shalt.err (!%p882_p6)
}
 0x6ec   :  { %s886_s17 = scalar_lea.hbm %s1184_s13, 64 }
 0x6ed   :  { %p887_p7 = scmp.ne.s32.totalorder %s1184_s13, %s886_s17  ;;  %p890_p8 = scmp.lt.u32.totalorder %s886_s17, %s1184_s13 }
 0x6ef   :  { %p892_p9 = pnand %p890_p8, %p887_p7 }
 0x6f1   :  { %895 = shalt.err (!%p892_p9)
}
 0x6f2   :  { %637 = dma.vmem_to_hbm [thread:$0]  %s635_s6, 64, %s1184_s13, [#allocation4]  }
 0x6f3   :  { %900 = dma.done.wait [#allocation4], 64  }
 0x6f4   :  { %901 = vsyncadd [#allocation4], 4294967232 }
 0x6f5   :  { %641 = vsyncpa [#allocation3], 1 }
 0x6f6   :  { %642 = vsyncpa [#allocation6], 1 }
 0x6f7   :  { %643 = vsyncpa [#allocation4], 1 }

</bundles_post_ra>
